<compile_context>
chip_gen: v5e
topology: v5e:2x2
jax: 0.10.0
libtpu: 0.0.40
codegen_flags: <defaults>
</compile_context>

<pallas_src>
import functools

import jax
import jax.numpy as jnp
from jax.experimental import pallas as pl
from jax.experimental.pallas import tpu as pltpu


def _channel_attention_kernel(x_ref, w1_ref, w2_ref, o_ref, p_ref,
                              *, bblk, hw, fold):
    """One grid step processes `bblk` batch elements, layout (bblk, C, HW).

    p_ref: (C, 2*bblk) VMEM scratch holding the pooled columns, ordered
           [avg_0 .. avg_{bblk-1}, max_0 .. max_{bblk-1}].
    """
    inv_hw = 1.0 / float(hw)

    # ---- Phase 1: pooled stats (avg & max) for every batch element. -------
    for b in range(bblk):
        x = x_ref[b]                                            # (C, HW)
        if fold:
            # Fold the two 128-lane halves with VPU ops first so both stats
            # reuse the same loaded vregs, then a half-width XLU reduce each.
            half = hw // 2
            xl = x[:, :half]
            xr = x[:, half:]
            sum_part = xl + xr
            max_part = jnp.maximum(xl, xr)
        else:
            sum_part = x
            max_part = x
        avg = jnp.sum(sum_part, axis=-1, keepdims=True) * inv_hw   # (C, 1)
        mx = jnp.max(max_part, axis=-1, keepdims=True)             # (C, 1)
        # Cheap single-lane stores into the scratch; channels stay on sublanes.
        p_ref[:, b:b + 1] = avg
        p_ref[:, bblk + b:bblk + b + 1] = mx

    # ---- Phase 2: one batched shared-MLP over all 2*bblk pooled columns. --
    w1 = w1_ref[...]                                            # (hid, C)
    w2 = w2_ref[...]                                            # (C, hid)
    p = p_ref[...]                                              # (C, 2*bblk)
    h = jnp.maximum(
        jnp.dot(w1, p, preferred_element_type=jnp.float32), 0.0)  # (hid, 2*bblk)
    zz = jnp.dot(w2, h, preferred_element_type=jnp.float32)       # (C, 2*bblk)
    # avg branch + max branch, one contiguous lane-slice add, then sigmoid.
    s = jax.nn.sigmoid(zz[:, :bblk] + zz[:, bblk:])                # (C, bblk)

    # ---- Phase 3: scale.  Re-read x_ref[b] so the 24-vreg tile was not ----
    # held live across the MLP chain (no vreg spills for larger bblk).
    for b in range(bblk):
        o_ref[b] = (x_ref[b] * s[:, b:b + 1]).astype(o_ref.dtype)  # lane bcast


def channel_attention(x, w1, w2, *, max_block_bytes=4 << 20,
                      max_bblk_unroll=8, min_grid_steps=1):
    """x: (B, C, H, W) f32; w1: (C//r, C); w2: (C, C//r). Returns (B, C, H, W)."""
    B, C, H, W = x.shape
    HW = H * W
    hid = w1.shape[0]
    itemsize = jnp.dtype(x.dtype).itemsize
    x2 = x.reshape(B, C, HW)

    # Batch-block selection.  Real VMEM residency is ~2x(in)+2x(out)+weights
    # ~= 4x block, so the per-block budget is max_block_bytes // 4.  The static
    # unroll of the per-batch loops is additionally capped.
    per_batch_bytes = C * HW * itemsize
    block_budget = max(per_batch_bytes, max_block_bytes // 4)
    bblk = min(B, max_bblk_unroll)
    while bblk > 1 and (B % bblk or bblk * per_batch_bytes > block_budget):
        bblk -= 1
    # Optionally force at least `min_grid_steps` grid steps (v7x: pass 2 so the
    # "parallel" axis shards across both TensorCores once B allows it).
    while bblk > 1 and B // bblk < min_grid_steps:
        bblk -= 1
        while B % bblk:
            bblk -= 1
    grid = (B // bblk,)

    # Half-fold is only lane-aligned when each half is a multiple of 128 lanes.
    fold = (HW % 2 == 0) and ((HW // 2) % 128 == 0)

    cost = pl.CostEstimate(
        flops=3 * B * C * HW + 8 * B * C * hid,    # pools + scale + tiny MLP
        transcendentals=B * C,                      # sigmoid
        bytes_accessed=(2 * B * C * HW + 2 * C * hid) * itemsize,
    )

    kernel = functools.partial(
        _channel_attention_kernel, bblk=bblk, hw=HW, fold=fold)

    out = pl.pallas_call(
        kernel,
        out_shape=jax.ShapeDtypeStruct((B, C, HW), x.dtype),
        grid_spec=pltpu.PrefetchScalarGridSpec(
            num_scalar_prefetch=0,
            grid=grid,
            in_specs=[
                pl.BlockSpec((bblk, C, HW), lambda i: (i, 0, 0)),  # x slab
                pl.BlockSpec((hid, C), lambda i: (0, 0)),          # fc1 weight
                pl.BlockSpec((C, hid), lambda i: (0, 0)),          # fc2 weight
            ],
            out_specs=pl.BlockSpec((bblk, C, HW), lambda i: (i, 0, 0)),
            scratch_shapes=[pltpu.VMEM((C, 2 * bblk), jnp.float32)],
        ),
        compiler_params=pltpu.CompilerParams(
            dimension_semantics=("parallel",)),
        cost_estimate=cost,
    )(x2, w1, w2)
    return out.reshape(B, C, H, W)


def channel_attention_ref(x, w1, w2):
    """Pure-JAX reference mirroring the PyTorch forward."""
    avg = jnp.mean(x, axis=(2, 3), keepdims=True)            # (B, C, 1, 1)
    mx = jnp.max(x, axis=(2, 3), keepdims=True)              # (B, C, 1, 1)

    def mlp(p):                                              # 1x1 convs == matmuls
        p = p[:, :, 0, 0]                                    # (B, C)
        h = jnp.maximum(p @ w1.T, 0.0)                       # (B, C//r)
        z = h @ w2.T                                         # (B, C)
        return z[:, :, None, None]

    s = jax.nn.sigmoid(mlp(avg) + mlp(mx))
    return x * s


if __name__ == "__main__":
    B, C, H, W = 2, 96, 16, 16      # in_planes=96 (module default)
    ratio = 16
    hid = C // ratio                # 6

    key = jax.random.PRNGKey(0)
    kx, k1, k2 = jax.random.split(key, 3)
    x = jax.random.normal(kx, (B, C, H, W), dtype=jnp.float32)
    # Conv2d(in_planes, in_planes//ratio, 1, bias=False).weight -> (C//r, C, 1, 1) squeezed
    w1 = jax.random.normal(k1, (hid, C), dtype=jnp.float32) * 0.1
    # Conv2d(in_planes//ratio, in_planes, 1, bias=False).weight -> (C, C//r, 1, 1) squeezed
    w2 = jax.random.normal(k2, (C, hid), dtype=jnp.float32) * 0.1

    out = channel_attention(x, w1, w2)
    out = jax.block_until_ready(out)

    ref = channel_attention_ref(x, w1, w2)
    assert out.shape == (B, C, H, W)
    assert jnp.allclose(out, ref, atol=1e-5, rtol=1e-5), "mismatch vs reference"

    print("KERNEL_OK")
</pallas_src>

<mosaic_0001>
module attributes {stable_mosaic.version = 11 : i64} {
  func.func @_channel_attention_kernel(%arg0: i32, %arg1: memref<2x96x256xf32, #tpu.memory_space<vmem>>, %arg2: memref<6x96xf32, #tpu.memory_space<vmem>>, %arg3: memref<96x6xf32, #tpu.memory_space<vmem>>, %arg4: memref<2x96x256xf32, #tpu.memory_space<vmem>>, %arg5: memref<96x4xf32, #tpu.memory_space<vmem>>) attributes {dimension_semantics = [#tpu.dimension_semantics<parallel>], iteration_bounds = array<i64: 1>, scalar_prefetch = 0 : i64, scratch_operands = 1 : i64, tpu.core_type = #tpu.core_type<tc>, window_params = [{transform_indices = @transform_0, window_bounds = array<i64: 2, 96, 256>}, {pipeline_mode = #tpu.pipeline_mode<synchronous>, transform_indices = @transform_1, window_bounds = array<i64: 6, 96>}, {pipeline_mode = #tpu.pipeline_mode<synchronous>, transform_indices = @transform_2, window_bounds = array<i64: 96, 6>}, {transform_indices = @transform_3, window_bounds = array<i64: 2, 96, 256>}]} {
    %c0 = arith.constant 0 : index
    %c0_0 = arith.constant 0 : index
    %c0_1 = arith.constant 0 : index
    %0 = vector.load %arg1[%c0, %c0_0, %c0_1] : memref<2x96x256xf32, #tpu.memory_space<vmem>>, vector<1x96x256xf32>
    %1 = vector.shape_cast %0 : vector<1x96x256xf32> to vector<96x256xf32>
    %2 = vector.extract_strided_slice %1 {offsets = [0, 0], sizes = [96, 128], strides = [1, 1]} : vector<96x256xf32> to vector<96x128xf32>
    %3 = vector.extract_strided_slice %1 {offsets = [0, 128], sizes = [96, 128], strides = [1, 1]} : vector<96x256xf32> to vector<96x128xf32>
    %4 = arith.addf %2, %3 : vector<96x128xf32>
    %5 = arith.maximumf %2, %3 : vector<96x128xf32>
    %cst = arith.constant dense<0.000000e+00> : vector<96xf32>
    %6 = vector.multi_reduction <add>, %4, %cst [1] : vector<96x128xf32> to vector<96xf32>
    %7 = vector.shape_cast %6 : vector<96xf32> to vector<96x1xf32>
    %cst_2 = arith.constant 3.906250e-03 : f32
    %8 = vector.broadcast %cst_2 : f32 to vector<96x1xf32>
    %9 = arith.mulf %7, %8 : vector<96x1xf32>
    %cst_3 = arith.constant dense<0xFF800000> : vector<96xf32>
    %10 = vector.multi_reduction <maximumf>, %5, %cst_3 [1] : vector<96x128xf32> to vector<96xf32>
    %11 = vector.shape_cast %10 : vector<96xf32> to vector<96x1xf32>
    %c0_4 = arith.constant 0 : index
    %c0_5 = arith.constant 0 : index
    %12 = vector.load %arg5[%c0_4, %c0_5] : memref<96x4xf32, #tpu.memory_space<vmem>>, vector<96x1xf32>
    tpu.vector_store %arg5[%c0_4, %c0_5], %9 {strides = array<i32>} : memref<96x4xf32, #tpu.memory_space<vmem>>, vector<96x1xf32>,
    %c0_6 = arith.constant 0 : index
    %c2 = arith.constant 2 : index
    %13 = vector.load %arg5[%c0_6, %c2] : memref<96x4xf32, #tpu.memory_space<vmem>>, vector<96x1xf32>
    tpu.vector_store %arg5[%c0_6, %c2], %11 {strides = array<i32>} : memref<96x4xf32, #tpu.memory_space<vmem>>, vector<96x1xf32>,
    %c1 = arith.constant 1 : index
    %c0_7 = arith.constant 0 : index
    %c0_8 = arith.constant 0 : index
    %14 = vector.load %arg1[%c1, %c0_7, %c0_8] : memref<2x96x256xf32, #tpu.memory_space<vmem>>, vector<1x96x256xf32>
    %15 = vector.shape_cast %14 : vector<1x96x256xf32> to vector<96x256xf32>
    %16 = vector.extract_strided_slice %15 {offsets = [0, 0], sizes = [96, 128], strides = [1, 1]} : vector<96x256xf32> to vector<96x128xf32>
    %17 = vector.extract_strided_slice %15 {offsets = [0, 128], sizes = [96, 128], strides = [1, 1]} : vector<96x256xf32> to vector<96x128xf32>
    %18 = arith.addf %16, %17 : vector<96x128xf32>
    %19 = arith.maximumf %16, %17 : vector<96x128xf32>
    %cst_9 = arith.constant dense<0.000000e+00> : vector<96xf32>
    %20 = vector.multi_reduction <add>, %18, %cst_9 [1] : vector<96x128xf32> to vector<96xf32>
    %21 = vector.shape_cast %20 : vector<96xf32> to vector<96x1xf32>
    %cst_10 = arith.constant 3.906250e-03 : f32
    %22 = vector.broadcast %cst_10 : f32 to vector<96x1xf32>
    %23 = arith.mulf %21, %22 : vector<96x1xf32>
    %cst_11 = arith.constant dense<0xFF800000> : vector<96xf32>
    %24 = vector.multi_reduction <maximumf>, %19, %cst_11 [1] : vector<96x128xf32> to vector<96xf32>
    %25 = vector.shape_cast %24 : vector<96xf32> to vector<96x1xf32>
    %c0_12 = arith.constant 0 : index
    %c1_13 = arith.constant 1 : index
    %26 = vector.load %arg5[%c0_12, %c1_13] : memref<96x4xf32, #tpu.memory_space<vmem>>, vector<96x1xf32>
    tpu.vector_store %arg5[%c0_12, %c1_13], %23 {strides = array<i32>} : memref<96x4xf32, #tpu.memory_space<vmem>>, vector<96x1xf32>,
    %c0_14 = arith.constant 0 : index
    %c3 = arith.constant 3 : index
    %27 = vector.load %arg5[%c0_14, %c3] : memref<96x4xf32, #tpu.memory_space<vmem>>, vector<96x1xf32>
    tpu.vector_store %arg5[%c0_14, %c3], %25 {strides = array<i32>} : memref<96x4xf32, #tpu.memory_space<vmem>>, vector<96x1xf32>,
    %c0_15 = arith.constant 0 : index
    %c0_16 = arith.constant 0 : index
    %28 = vector.load %arg2[%c0_15, %c0_16] : memref<6x96xf32, #tpu.memory_space<vmem>>, vector<6x96xf32>
    %c0_17 = arith.constant 0 : index
    %c0_18 = arith.constant 0 : index
    %29 = vector.load %arg3[%c0_17, %c0_18] : memref<96x6xf32, #tpu.memory_space<vmem>>, vector<96x6xf32>
    %c0_19 = arith.constant 0 : index
    %c0_20 = arith.constant 0 : index
    %30 = vector.load %arg5[%c0_19, %c0_20] : memref<96x4xf32, #tpu.memory_space<vmem>>, vector<96x4xf32>
    %cst_21 = arith.constant dense<0.000000e+00> : vector<6x4xf32>
    %31 = tpu.matmul %28, %30, %cst_21 {dimension_numbers = #tpu.dot_dimension_numbers<[1], [0], [0], [1], [0, 0, 1, 1], [], []>} : vector<6x96xf32>, vector<96x4xf32>, vector<6x4xf32> -> vector<6x4xf32>
    %cst_22 = arith.constant 0.000000e+00 : f32
    %32 = vector.broadcast %cst_22 : f32 to vector<6x4xf32>
    %33 = arith.maximumf %31, %32 : vector<6x4xf32>
    %cst_23 = arith.constant dense<0.000000e+00> : vector<96x4xf32>
    %34 = tpu.matmul %29, %33, %cst_23 {dimension_numbers = #tpu.dot_dimension_numbers<[1], [0], [0], [1], [0, 0, 1, 1], [], []>} : vector<96x6xf32>, vector<6x4xf32>, vector<96x4xf32> -> vector<96x4xf32>
    %35 = vector.extract_strided_slice %34 {offsets = [0, 0], sizes = [96, 2], strides = [1, 1]} : vector<96x4xf32> to vector<96x2xf32>
    %36 = vector.extract_strided_slice %34 {offsets = [0, 2], sizes = [96, 2], strides = [1, 1]} : vector<96x4xf32> to vector<96x2xf32>
    %37 = arith.addf %35, %36 : vector<96x2xf32>
    %38 = arith.negf %37 : vector<96x2xf32>
    %39 = math.exp %38 : vector<96x2xf32>
    %cst_24 = arith.constant 1.000000e+00 : f32
    %40 = vector.broadcast %cst_24 : f32 to vector<96x2xf32>
    %41 = arith.addf %40, %39 : vector<96x2xf32>
    %42 = arith.divf %40, %41 : vector<96x2xf32>
    %c0_25 = arith.constant 0 : index
    %c0_26 = arith.constant 0 : index
    %c0_27 = arith.constant 0 : index
    %43 = vector.load %arg1[%c0_25, %c0_26, %c0_27] : memref<2x96x256xf32, #tpu.memory_space<vmem>>, vector<1x96x256xf32>
    %44 = vector.shape_cast %43 : vector<1x96x256xf32> to vector<96x256xf32>
    %45 = vector.extract_strided_slice %42 {offsets = [0, 0], sizes = [96, 1], strides = [1, 1]} : vector<96x2xf32> to vector<96x1xf32>
    %46 = vector.broadcast %45 : vector<96x1xf32> to vector<96x256xf32>
    %47 = arith.mulf %44, %46 : vector<96x256xf32>
    %c0_28 = arith.constant 0 : index
    %c0_29 = arith.constant 0 : index
    %c0_30 = arith.constant 0 : index
    %48 = vector.load %arg4[%c0_28, %c0_29, %c0_30] : memref<2x96x256xf32, #tpu.memory_space<vmem>>, vector<1x96x256xf32>
    %49 = vector.shape_cast %48 : vector<1x96x256xf32> to vector<96x256xf32>
    %50 = vector.shape_cast %47 : vector<96x256xf32> to vector<1x96x256xf32>
    tpu.vector_store %arg4[%c0_28, %c0_29, %c0_30], %50 {strides = array<i32>} : memref<2x96x256xf32, #tpu.memory_space<vmem>>, vector<1x96x256xf32>,
    %c1_31 = arith.constant 1 : index
    %c0_32 = arith.constant 0 : index
    %c0_33 = arith.constant 0 : index
    %51 = vector.load %arg1[%c1_31, %c0_32, %c0_33] : memref<2x96x256xf32, #tpu.memory_space<vmem>>, vector<1x96x256xf32>
    %52 = vector.shape_cast %51 : vector<1x96x256xf32> to vector<96x256xf32>
    %53 = vector.extract_strided_slice %42 {offsets = [0, 1], sizes = [96, 1], strides = [1, 1]} : vector<96x2xf32> to vector<96x1xf32>
    %54 = vector.broadcast %53 : vector<96x1xf32> to vector<96x256xf32>
    %55 = arith.mulf %52, %54 : vector<96x256xf32>
    %c1_34 = arith.constant 1 : index
    %c0_35 = arith.constant 0 : index
    %c0_36 = arith.constant 0 : index
    %56 = vector.load %arg4[%c1_34, %c0_35, %c0_36] : memref<2x96x256xf32, #tpu.memory_space<vmem>>, vector<1x96x256xf32>
    %57 = vector.shape_cast %56 : vector<1x96x256xf32> to vector<96x256xf32>
    %58 = vector.shape_cast %55 : vector<96x256xf32> to vector<1x96x256xf32>
    tpu.vector_store %arg4[%c1_34, %c0_35, %c0_36], %58 {strides = array<i32>} : memref<2x96x256xf32, #tpu.memory_space<vmem>>, vector<1x96x256xf32>,
    return
  }
  func.func @transform_0(%arg0: i32) -> (i32, i32, i32) {
    %c0_i32 = arith.constant 0 : i32
    %c0_i32_0 = arith.constant 0 : i32
    %c0_i32_1 = arith.constant 0 : i32
    return %arg0, %c0_i32, %c0_i32_0 : i32, i32, i32
  }
  func.func @transform_1(%arg0: i32) -> (i32, i32) {
    %c0_i32 = arith.constant 0 : i32
    %c0_i32_0 = arith.constant 0 : i32
    %c0_i32_1 = arith.constant 0 : i32
    return %c0_i32, %c0_i32_0 : i32, i32
  }
  func.func @transform_2(%arg0: i32) -> (i32, i32) {
    %c0_i32 = arith.constant 0 : i32
    %c0_i32_0 = arith.constant 0 : i32
    %c0_i32_1 = arith.constant 0 : i32
    return %c0_i32, %c0_i32_0 : i32, i32
  }
  func.func @transform_3(%arg0: i32) -> (i32, i32, i32) {
    %c0_i32 = arith.constant 0 : i32
    %c0_i32_0 = arith.constant 0 : i32
    %c0_i32_1 = arith.constant 0 : i32
    return %arg0, %c0_i32, %c0_i32_0 : i32, i32, i32
  }
}

</mosaic_0001>

<bundles_post_ra>
// kernel: tpu_custom_call.1
= control target key start
LH: loop header
LB: loop body
LE: loop exit
PB: predicated region body
PF: predicated region fallthrough
CT: control target
= control target key end

     0   :  { %8 = vsyncpa [#allocation4], 0  ;;  %s1475_s0 = inlined_call_operand.hbm [shape: f32[2,96,256], index: 0, kind: input, shape index: {}]   ;;  %s1476_s1 = inlined_call_operand.vmem [shape: f32[6,96], index: 1, kind: input, shape index: {}]   ;;  %s1477_s2 = inlined_call_operand.vmem [shape: f32[96,6], index: 2, kind: input, shape index: {}]   ;;  %s1478_s3 = inlined_call_operand.hbm [shape: f32[2,96,256], index: 3, kind: output, shape index: {}]  }
   0x1   :  { %9 = vsyncpa [#allocation5], 0  ;;  %s14_s14 = sshll.u32 %s1475_s0, 4  ;;  %s1156_s15 = smov [#allocation3]   ;;  %s15_s14 = int_to_ptr.hbm [resolvable:$true] %s14_s14 }
   0x2   :  { %s16_s16 = sshll.u32 %s1156_s15, 4  ;;  %s1157_s17 = smov 256   ;;  %s17_s16 = int_to_ptr.vmem [resolvable:$true] %s16_s16 }
   0x3   :  { %s1158_s18 = smov 16  }
   0x4   :  { %22 = dma.hbm_to_vmem [thread:$0]  %s15_s14, 6144, %s17_s16, [#allocation4], %s1157_s17, %s1157_s17, %s1158_s18  }
   0x5   :  { %1152 = dma.done.wait [#allocation4], 6144  }
   0x6   :  { %1153 = vsyncadd [#allocation4], 4294961152  ;;  %v188_v0 = vld [vmem:[#allocation3 + $0x170] sm:$0xff]  ;;  %v189_v1 = vld [vmem:[#allocation3 + $0x178] sm:$0xff]  ;;  %vm139_vm0 = vcmask 7168   ;;  %vm152_vm1 = vcmask 23568  }
   0x7   :  { %v53_v2 = vld [vmem:[#allocation3 + $0xb0] sm:$0xff]  ;;  %v201_v3 = vadd.f32 %v189_v1, %v188_v0  ;;  %v54_v4 = vld [vmem:[#allocation3 + $0xb8] sm:$0xff]  ;;  %v51_v9 = vld [vmem:[#allocation3 + $0xa0] sm:$0xff]  ;;  %v213_v18 = vmax.f32 %v188_v0, %v189_v1  ;;  %vm274_vm2 = vcmask 15368   ;;  %vm287_vm3 = vcmask 31768   ;;  %s1159_s16 = smov 126  }
   0x8   :  { %v49_v5 = vld [vmem:[#allocation3 + $0x90] sm:$0xff]  ;;  %v50_v6 = vld [vmem:[#allocation3 + $0x98] sm:$0xff]  ;;  %v66_v7 = vadd.f32 %v54_v4, %v53_v2  ;;  %v52_v10 = vld [vmem:[#allocation3 + $0xa8] sm:$0xff]  ;;  %v78_v13 = vmax.f32 %v53_v2, %v54_v4  ;;  %vm325_vm4 = vcmask 785408   ;;  %vm387_vm5 = vcmask 1045504   ;;  %s991_s21 = sshll.u32 %s1478_s3, 4  ;;  %s992_s21 = int_to_ptr.hbm [resolvable:$true] %s991_s21 }
   0x9   :  { %v64_v8 = vadd.f32 %v50_v6, %v49_v5  ;;  %236 = vadd.xlane.f32.xlu1 %v201_v3  ;;  %v186_v11 = vld [vmem:[#allocation3 + $0x160] sm:$0xff]  ;;  %v187_v12 = vld [vmem:[#allocation3 + $0x168] sm:$0xff]  ;;  %v65_v14 = vadd.f32 %v52_v10, %v51_v9  ;;  %v77_v19 = vmax.f32 %v51_v9, %v52_v10  ;;  %v184_v21 = vld [vmem:[#allocation3 + $0x150] sm:$0xff]  ;;  %v76_v23 = vmax.f32 %v49_v5, %v50_v6 }
   0xa   :  { %101 = vadd.xlane.f32.xlu0 %v66_v7  ;;  %v200_v15 = vadd.f32 %v187_v12, %v186_v11  ;;  %v47_v16 = vld [vmem:[#allocation3 + $0x80] sm:$0xff]  ;;  %v48_v17 = vld [vmem:[#allocation3 + $0x88] sm:$0xff]  ;;  %v185_v22 = vld [vmem:[#allocation3 + $0x158] sm:$0xff]  ;;  %v212_v25 = vmax.f32 %v186_v11, %v187_v12  ;;  %vm350_vm6 = vcmask 48128  }
   0xb   :  { %97 = vadd.xlane.f32.xlu2 %v64_v8  ;;  %v63_v20 = vadd.f32 %v48_v17, %v47_v16  ;;  %v199_v24 = vadd.f32 %v185_v22, %v184_v21  ;;  %v182_v26 = vld [vmem:[#allocation3 + $0x140] sm:$0xff]  ;;  %v183_v27 = vld [vmem:[#allocation3 + $0x148] sm:$0xff]  ;;  %v45_v28 = vld [vmem:[#allocation3 + $0x70] sm:$0xff]  ;;  %v75_v32 = vmax.f32 %v47_v16, %v48_v17  ;;  %v211_v38 = vmax.f32 %v184_v21, %v185_v22 }
   0xc   :  { %v46_v29 = vld [vmem:[#allocation3 + $0x78] sm:$0xff]  ;;  %v198_v30 = vadd.f32 %v183_v27, %v182_v26  ;;  %v43_v33 = vld [vmem:[#allocation3 + $0x60] sm:$0xff]  ;;  %v44_v34 = vld [vmem:[#allocation3 + $0x68] sm:$0xff]  ;;  %v210_v42 = vmax.f32 %v182_v26, %v183_v27 }
   0xd   :  { %v62_v31 = vadd.f32 %v46_v29, %v45_v28  ;;  %v180_v35 = vld [vmem:[#allocation3 + $0x130] sm:$0xff]  ;;  %v181_v36 = vld [vmem:[#allocation3 + $0x138] sm:$0xff]  ;;  %v61_v37 = vadd.f32 %v44_v34, %v43_v33  ;;  %v74_v43 = vmax.f32 %v45_v28, %v46_v29  ;;  %v178_v45 = vld [vmem:[#allocation3 + $0x120] sm:$0xff]  ;;  %v73_v47 = vmax.f32 %v43_v33, %v44_v34 }
   0xe   :  { %v197_v39 = vadd.f32 %v181_v36, %v180_v35  ;;  %v41_v40 = vld [vmem:[#allocation3 + $0x50] sm:$0xff]  ;;  %v42_v41 = vld [vmem:[#allocation3 + $0x58] sm:$0xff]  ;;  %v179_v46 = vld [vmem:[#allocation3 + $0x128] sm:$0xff]  ;;  %v209_v49 = vmax.f32 %v180_v35, %v181_v36 }
   0xf   :  { %v60_v44 = vadd.f32 %v42_v41, %v41_v40  ;;  %v196_v48 = vadd.f32 %v179_v46, %v178_v45  ;;  %v176_v50 = vld [vmem:[#allocation3 + $0x110] sm:$0xff]  ;;  %v177_v51 = vld [vmem:[#allocation3 + $0x118] sm:$0xff]  ;;  %v39_v52 = vld [vmem:[#allocation3 + $0x40] sm:$0xff]  ;;  %v72_v56 = vmax.f32 %v41_v40, %v42_v41  ;;  %v208_v62 = vmax.f32 %v178_v45, %v179_v46 }
  0x10   :  { %v40_v53 = vld [vmem:[#allocation3 + $0x48] sm:$0xff]  ;;  %v195_v54 = vadd.f32 %v177_v51, %v176_v50  ;;  %v37_v57 = vld [vmem:[#allocation3 + $0x30] sm:$0xff]  ;;  %v38_v58 = vld [vmem:[#allocation3 + $0x38] sm:$0xff]  ;;  %v207_v2 = vmax.f32 %v176_v50, %v177_v51 }
  0x11   :  { %137 = vmax.xlane.f32.xlu1 %v78_v13  ;;  %v59_v55 = vadd.f32 %v40_v53, %v39_v52  ;;  %v174_v59 = vld [vmem:[#allocation3 + $0x100] sm:$0xff]  ;;  %v175_v60 = vld [vmem:[#allocation3 + $0x108] sm:$0xff]  ;;  %v58_v61 = vadd.f32 %v38_v58, %v37_v57  ;;  %v71_v3 = vmax.f32 %v39_v52, %v40_v53  ;;  %v172_v5 = vld [vmem:[#allocation3 + $0xf0] sm:$0xff]  ;;  %v70_v7 = vmax.f32 %v37_v57, %v38_v58 }
  0x12   :  { %99 = vadd.xlane.f32.xlu0 %v65_v14  ;;  %v194_v63 = vadd.f32 %v175_v60, %v174_v59  ;;  %v35_v0 = vld [vmem:[#allocation3 + $0x20] sm:$0xff]  ;;  %v36_v1 = vld [vmem:[#allocation3 + $0x28] sm:$0xff]  ;;  %v173_v6 = vld [vmem:[#allocation3 + $0xf8] sm:$0xff]  ;;  %v206_v9 = vmax.f32 %v174_v59, %v175_v60 }
  0x13   :  { %234 = vadd.xlane.f32.xlu2 %v200_v15  ;;  %v57_v4 = vadd.f32 %v36_v1, %v35_v0  ;;  %v193_v8 = vadd.f32 %v173_v6, %v172_v5  ;;  %v170_v10 = vld [vmem:[#allocation3 + $0xe0] sm:$0xff]  ;;  %v171_v11 = vld [vmem:[#allocation3 + $0xe8] sm:$0xff]  ;;  %v33_v12 = vld [vmem:[#allocation3 + $0x10] sm:$0xff]  ;;  %v69_v16 = vmax.f32 %v35_v0, %v36_v1  ;;  %v205_v22 = vmax.f32 %v172_v5, %v173_v6 }
  0x14   :  { %v34_v13 = vld [vmem:[#allocation3 + $0x18] sm:$0xff]  ;;  %v192_v14 = vadd.f32 %v171_v11, %v170_v10  ;;  %v31_v17 = vld [vmem:[#allocation3] sm:$0xff]  ;;  %v204_v26 = vmax.f32 %v170_v10, %v171_v11 }
  0x15   :  { %v56_v15 = vadd.f32 %v34_v13, %v33_v12  ;;  %v68_v27 = vmax.f32 %v33_v12, %v34_v13 }
  0x19   :  { %272 = vmax.xlane.f32.xlu1 %v213_v18  ;;  %v32_v18 = vld [vmem:[#allocation3 + $0x8] sm:$0xff] }
  0x1a   :  { %135 = vmax.xlane.f32.xlu0 %v77_v19  ;;  %v168_v19 = vld [vmem:[#allocation3 + $0xd0] sm:$0xff]  ;;  %v55_v21 = vadd.f32 %v32_v18, %v31_v17  ;;  %v67_v35 = vmax.f32 %v31_v17, %v32_v18 }
  0x1b   :  { %95 = vadd.xlane.f32.xlu2 %v63_v20  ;;  %v169_v20 = vld [vmem:[#allocation3 + $0xd8] sm:$0xff] }
  0x21   :  { %133 = vmax.xlane.f32.xlu1 %v76_v23  ;;  %v191_v23 = vadd.f32 %v169_v20, %v168_v19 }
  0x22   :  { %232 = vadd.xlane.f32.xlu0 %v199_v24  ;;  %v166_v24 = vld [vmem:[#allocation3 + $0xc0] sm:$0xff] }
  0x23   :  { %270 = vmax.xlane.f32.xlu2 %v212_v25  ;;  %v167_v25 = vld [vmem:[#allocation3 + $0xc8] sm:$0xff] }
  0x24   :  { %v190_v28 = vadd.f32 %v167_v25, %v166_v24  ;;  %v202_v36 = vmax.f32 %v166_v24, %v167_v25 }
  0x29   :  { %230 = vadd.xlane.f32.xlu1 %v198_v30 }
  0x2a   :  { %93 = vadd.xlane.f32.xlu0 %v62_v31 }
  0x2b   :  { %131 = vmax.xlane.f32.xlu2 %v75_v32  ;;  %v203_v32 = vmax.f32 %v168_v19, %v169_v20 }
  0x31   :  { %91 = vadd.xlane.f32.xlu1 %v61_v37 }
  0x32   :  { %268 = vmax.xlane.f32.xlu0 %v211_v38 }
  0x33   :  { %228 = vadd.xlane.f32.xlu2 %v197_v39 }
  0x39   :  { %266 = vmax.xlane.f32.xlu1 %v210_v42 }
  0x3a   :  { %129 = vmax.xlane.f32.xlu0 %v74_v43 }
  0x3b   :  { %89 = vadd.xlane.f32.xlu2 %v60_v44 }
  0x41   :  { %127 = vmax.xlane.f32.xlu1 %v73_v47 }
  0x42   :  { %226 = vadd.xlane.f32.xlu0 %v196_v48 }
  0x43   :  { %264 = vmax.xlane.f32.xlu2 %v209_v49 }
  0x49   :  { %224 = vadd.xlane.f32.xlu1 %v195_v54 }
  0x4a   :  { %87 = vadd.xlane.f32.xlu0 %v59_v55 }
  0x4b   :  { %125 = vmax.xlane.f32.xlu2 %v72_v56 }
  0x51   :  { %85 = vadd.xlane.f32.xlu1 %v58_v61 }
  0x52   :  { %262 = vmax.xlane.f32.xlu0 %v208_v62 }
  0x53   :  { %222 = vadd.xlane.f32.xlu2 %v194_v63 }
  0x59   :  { %260 = vmax.xlane.f32.xlu1 %v207_v2 }
  0x5a   :  { %123 = vmax.xlane.f32.xlu0 %v71_v3 }
  0x5b   :  { %83 = vadd.xlane.f32.xlu2 %v57_v4 }
  0x61   :  { %121 = vmax.xlane.f32.xlu1 %v70_v7 }
  0x62   :  { %220 = vadd.xlane.f32.xlu0 %v193_v8 }
  0x63   :  { %258 = vmax.xlane.f32.xlu2 %v206_v9 }
  0x69   :  { %218 = vadd.xlane.f32.xlu1 %v192_v14 }
  0x6a   :  { %81 = vadd.xlane.f32.xlu0 %v56_v15 }
  0x6b   :  { %119 = vmax.xlane.f32.xlu2 %v69_v16 }
  0x71   :  { %79 = vadd.xlane.f32.xlu1 %v55_v21 }
  0x72   :  { %256 = vmax.xlane.f32.xlu0 %v205_v22 }
  0x73   :  { %216 = vadd.xlane.f32.xlu2 %v191_v23 }
  0x79   :  { %254 = vmax.xlane.f32.xlu1 %v204_v26 }
  0x7a   :  { %117 = vmax.xlane.f32.xlu0 %v68_v27 }
  0x7b   :  { %214 = vadd.xlane.f32.xlu2 %v190_v28 }
  0x7c   :  { %v237_v29 = vpop.xlane.xlu1 %236 }
  0x7d   :  { %v102_v30 = vpop.xlane.xlu0 %101  ;;  %v249_v37 = vmul.f32 0.00390625, %v237_v29 }
  0x7e   :  { %v98_v31 = vpop.xlane.xlu2 %97  ;;  %v114_v33 = vmul.f32 0.00390625, %v102_v30 }
  0x7f   :  { %v112_v34 = vmul.f32 0.00390625, %v98_v31 }
  0x80   :  { %151 = vst.msk [vmem:[#allocation2 + $0x58] sm:$0xff] %vm139_vm0, %v114_v33 }
  0x81   :  { %149 = vst.msk [vmem:[#allocation2 + $0x48] sm:$0xff] %vm139_vm0, %v112_v34  ;;  %252 = vmax.xlane.f32.xlu1 %v203_v32 }
  0x82   :  { %115 = vmax.xlane.f32.xlu0 %v67_v35 }
  0x83   :  { %250 = vmax.xlane.f32.xlu2 %v202_v36 }
  0x84   :  { %v138_v38 = vpop.xlane.xlu1 %137 }
  0x85   :  { %164 = vst.msk [vmem:[#allocation2 + $0x58] sm:$0xff] %vm152_vm1, %v138_v38  ;;  %v100_v39 = vpop.xlane.xlu0 %99 }
  0x86   :  { %v235_v40 = vpop.xlane.xlu2 %234  ;;  %v113_v41 = vmul.f32 0.00390625, %v100_v39  ;;  %286 = vst.msk [vmem:[#allocation2 + $0x58] sm:$0xff] %vm274_vm2, %v249_v37 }
  0x87   :  { %v248_v43 = vmul.f32 0.00390625, %v235_v40 }
  0x88   :  { %150 = vst.msk [vmem:[#allocation2 + $0x50] sm:$0xff] %vm139_vm0, %v113_v41 }
  0x8c   :  { %v273_v42 = vpop.xlane.xlu1 %272 }
  0x8d   :  { %299 = vst.msk [vmem:[#allocation2 + $0x58] sm:$0xff] %vm287_vm3, %v273_v42  ;;  %v136_v44 = vpop.xlane.xlu0 %135 }
  0x8e   :  { %v96_v45 = vpop.xlane.xlu2 %95  ;;  %163 = vst.msk [vmem:[#allocation2 + $0x50] sm:$0xff] %vm152_vm1, %v136_v44 }
  0x8f   :  { %v111_v46 = vmul.f32 0.00390625, %v96_v45  ;;  %285 = vst.msk [vmem:[#allocation2 + $0x50] sm:$0xff] %vm274_vm2, %v248_v43 }
  0x91   :  { %148 = vst.msk [vmem:[#allocation2 + $0x40] sm:$0xff] %vm139_vm0, %v111_v46 }
  0x94   :  { %v134_v47 = vpop.xlane.xlu1 %133  ;;  %v324_v48 = vld [vmem:[#allocation2 + $0x58] sm:$0xff] }
  0x95   :  { %v233_v49 = vpop.xlane.xlu0 %232  ;;  %162 = vst.msk [vmem:[#allocation2 + $0x48] sm:$0xff] %vm152_vm1, %v134_v47  ;;  %333 = vmatpush.msra.mxu0 %v324_v48 }
  0x96   :  { %v271_v50 = vpop.xlane.xlu2 %270  ;;  %v247_v51 = vmul.f32 0.00390625, %v233_v49 }
  0x97   :  { %298 = vst.msk [vmem:[#allocation2 + $0x50] sm:$0xff] %vm287_vm3, %v271_v50 }
  0x98   :  { %284 = vst.msk [vmem:[#allocation2 + $0x48] sm:$0xff] %vm274_vm2, %v247_v51  ;;  %v300_v51 = vld [vmem:[%s1476_s1] sm:$0x3f] }
  0x9c   :  { %v231_v52 = vpop.xlane.xlu1 %230 }
  0x9d   :  { %v246_v53 = vmul.f32 0.00390625, %v231_v52  ;;  %v94_v54 = vpop.xlane.xlu0 %93 }
  0x9e   :  { %v132_v55 = vpop.xlane.xlu2 %131  ;;  %v323_v56 = vld [vmem:[#allocation2 + $0x50] sm:$0xff]  ;;  %v110_v57 = vmul.f32 0.00390625, %v94_v54 }
  0x9f   :  { %161 = vst.msk [vmem:[#allocation2 + $0x40] sm:$0xff] %vm152_vm1, %v132_v55  ;;  %334 = vmatpush.msra.mxu0 %v323_v56  ;;  %v301_v55 = vld [vmem:[%s1477_s2] sm:$0xff] }
  0xa0   :  { %283 = vst.msk [vmem:[#allocation2 + $0x40] sm:$0xff] %vm274_vm2, %v246_v53  ;;  %v305_v56 = vld [vmem:[%s1477_s2 + $0x20] sm:$0xff] }
  0xa1   :  { %147 = vst.msk [vmem:[#allocation2 + $0x38] sm:$0xff] %vm139_vm0, %v110_v57  ;;  %v309_v57 = vld [vmem:[%s1477_s2 + $0x40] sm:$0xff] }
  0xa4   :  { %v92_v58 = vpop.xlane.xlu1 %91 }
  0xa5   :  { %v269_v59 = vpop.xlane.xlu0 %268  ;;  %v109_v60 = vmul.f32 0.00390625, %v92_v58  ;;  %v302_v58 = vld [vmem:[%s1477_s2 + $0x8] sm:$0xff] }
  0xa6   :  { %v229_v61 = vpop.xlane.xlu2 %228  ;;  %297 = vst.msk [vmem:[#allocation2 + $0x48] sm:$0xff] %vm287_vm3, %v269_v59  ;;  %v306_v59 = vld [vmem:[%s1477_s2 + $0x28] sm:$0xff] }
  0xa7   :  { %146 = vst.msk [vmem:[#allocation2 + $0x30] sm:$0xff] %vm139_vm0, %v109_v60  ;;  %v245_v63 = vmul.f32 0.00390625, %v229_v61  ;;  %v310_v60 = vld [vmem:[%s1477_s2 + $0x48] sm:$0xff]  ;;  %v303_v61 = vld [vmem:[%s1477_s2 + $0x10] sm:$0xff] }
  0xac   :  { %v267_v62 = vpop.xlane.xlu1 %266 }
  0xad   :  { %v130_v0 = vpop.xlane.xlu0 %129  ;;  %296 = vst.msk [vmem:[#allocation2 + $0x40] sm:$0xff] %vm287_vm3, %v267_v62  ;;  %v322_v1 = vld [vmem:[#allocation2 + $0x48] sm:$0xff]  ;;  %v307_v62 = vld [vmem:[%s1477_s2 + $0x30] sm:$0xff] }
  0xae   :  { %v90_v2 = vpop.xlane.xlu2 %89  ;;  %160 = vst.msk [vmem:[#allocation2 + $0x38] sm:$0xff] %vm152_vm1, %v130_v0  ;;  %335 = vmatpush.msra.mxu0 %v322_v1  ;;  %v304_v0 = vld [vmem:[%s1477_s2 + $0x18] sm:$0xff] }
  0xaf   :  { %v108_v3 = vmul.f32 0.00390625, %v90_v2  ;;  %282 = vst.msk [vmem:[#allocation2 + $0x38] sm:$0xff] %vm274_vm2, %v245_v63  ;;  %v311_v63 = vld [vmem:[%s1477_s2 + $0x50] sm:$0xff]  ;;  %v312_v1 = vld [vmem:[%s1477_s2 + $0x58] sm:$0xff] }
  0xb0   :  { %v308_v2 = vld [vmem:[%s1477_s2 + $0x38] sm:$0xff]  ;;  %s1162_s2 = smov [#allocation6]  }
  0xb1   :  { %145 = vst.msk [vmem:[#allocation2 + $0x28] sm:$0xff] %vm139_vm0, %v108_v3  ;;  %s989_s0 = sshll.u32 %s1162_s2, 4  ;;  %s990_s0 = int_to_ptr.vmem [resolvable:$true] %s989_s0 }
  0xb4   :  { %v128_v4 = vpop.xlane.xlu1 %127  ;;  %v321_v5 = vld [vmem:[#allocation2 + $0x40] sm:$0xff] }
  0xb5   :  { %v227_v6 = vpop.xlane.xlu0 %226  ;;  %159 = vst.msk [vmem:[#allocation2 + $0x30] sm:$0xff] %vm152_vm1, %v128_v4  ;;  %336 = vmatpush.msra.mxu0 %v321_v5 }
  0xb6   :  { %v265_v7 = vpop.xlane.xlu2 %264  ;;  %v244_v8 = vmul.f32 0.00390625, %v227_v6 }
  0xb7   :  { %295 = vst.msk [vmem:[#allocation2 + $0x38] sm:$0xff] %vm287_vm3, %v265_v7 }
  0xb8   :  { %281 = vst.msk [vmem:[#allocation2 + $0x30] sm:$0xff] %vm274_vm2, %v244_v8 }
  0xbc   :  { %v225_v9 = vpop.xlane.xlu1 %224 }
  0xbd   :  { %v243_v10 = vmul.f32 0.00390625, %v225_v9  ;;  %v88_v11 = vpop.xlane.xlu0 %87 }
  0xbe   :  { %v126_v12 = vpop.xlane.xlu2 %125  ;;  %v320_v13 = vld [vmem:[#allocation2 + $0x38] sm:$0xff]  ;;  %v107_v14 = vmul.f32 0.00390625, %v88_v11 }
  0xbf   :  { %158 = vst.msk [vmem:[#allocation2 + $0x28] sm:$0xff] %vm152_vm1, %v126_v12  ;;  %337 = vmatpush.msra.mxu0 %v320_v13 }
  0xc0   :  { %280 = vst.msk [vmem:[#allocation2 + $0x28] sm:$0xff] %vm274_vm2, %v243_v10 }
  0xc1   :  { %144 = vst.msk [vmem:[#allocation2 + $0x20] sm:$0xff] %vm139_vm0, %v107_v14 }
  0xc4   :  { %v86_v15 = vpop.xlane.xlu1 %85 }
  0xc5   :  { %v263_v16 = vpop.xlane.xlu0 %262  ;;  %v106_v17 = vmul.f32 0.00390625, %v86_v15  ;;  %v1160_v15 = vmov 0  }
  0xc6   :  { %v223_v18 = vpop.xlane.xlu2 %222  ;;  %294 = vst.msk [vmem:[#allocation2 + $0x30] sm:$0xff] %vm287_vm3, %v263_v16  ;;  %1041 = vset.pattern.permute.xlu1 %v1160_v15  ;;  %1039 = vset.pattern.permute.xlu0 %v1160_v15 }
  0xc7   :  { %143 = vst.msk [vmem:[#allocation2 + $0x18] sm:$0xff] %vm139_vm0, %v106_v17  ;;  %v242_v20 = vmul.f32 0.00390625, %v223_v18 }
  0xcc   :  { %v261_v19 = vpop.xlane.xlu1 %260 }
  0xcd   :  { %v124_v21 = vpop.xlane.xlu0 %123  ;;  %293 = vst.msk [vmem:[#allocation2 + $0x28] sm:$0xff] %vm287_vm3, %v261_v19  ;;  %v319_v22 = vld [vmem:[#allocation2 + $0x30] sm:$0xff]  ;;  %v1161_v19 = vmov 1  }
  0xce   :  { %v84_v23 = vpop.xlane.xlu2 %83  ;;  %157 = vst.msk [vmem:[#allocation2 + $0x20] sm:$0xff] %vm152_vm1, %v124_v21  ;;  %338 = vmatpush.msra.mxu0 %v319_v22  ;;  %1040 = vset.pattern.permute.xlu2 %v1161_v19 }
  0xcf   :  { %v105_v24 = vmul.f32 0.00390625, %v84_v23  ;;  %279 = vst.msk [vmem:[#allocation2 + $0x20] sm:$0xff] %vm274_vm2, %v242_v20 }
  0xd1   :  { %142 = vst.msk [vmem:[#allocation2 + $0x10] sm:$0xff] %vm139_vm0, %v105_v24 }
  0xd4   :  { %v122_v25 = vpop.xlane.xlu1 %121  ;;  %v318_v26 = vld [vmem:[#allocation2 + $0x28] sm:$0xff] }
  0xd5   :  { %v221_v27 = vpop.xlane.xlu0 %220  ;;  %156 = vst.msk [vmem:[#allocation2 + $0x18] sm:$0xff] %vm152_vm1, %v122_v25  ;;  %339 = vmatpush.msra.mxu0 %v318_v26 }
  0xd6   :  { %v259_v28 = vpop.xlane.xlu2 %258  ;;  %v241_v29 = vmul.f32 0.00390625, %v221_v27 }
  0xd7   :  { %292 = vst.msk [vmem:[#allocation2 + $0x20] sm:$0xff] %vm287_vm3, %v259_v28 }
  0xd8   :  { %278 = vst.msk [vmem:[#allocation2 + $0x18] sm:$0xff] %vm274_vm2, %v241_v29 }
  0xdc   :  { %v219_v30 = vpop.xlane.xlu1 %218 }
  0xdd   :  { %v240_v31 = vmul.f32 0.00390625, %v219_v30  ;;  %v82_v32 = vpop.xlane.xlu0 %81 }
  0xde   :  { %v120_v33 = vpop.xlane.xlu2 %119  ;;  %v317_v34 = vld [vmem:[#allocation2 + $0x20] sm:$0xff]  ;;  %v104_v35 = vmul.f32 0.00390625, %v82_v32 }
  0xdf   :  { %155 = vst.msk [vmem:[#allocation2 + $0x10] sm:$0xff] %vm152_vm1, %v120_v33  ;;  %340 = vmatpush.msra.mxu0 %v317_v34 }
  0xe0   :  { %277 = vst.msk [vmem:[#allocation2 + $0x10] sm:$0xff] %vm274_vm2, %v240_v31 }
  0xe1   :  { %141 = vst.msk [vmem:[#allocation2 + $0x8] sm:$0xff] %vm139_vm0, %v104_v35 }
  0xe4   :  { %v80_v36 = vpop.xlane.xlu1 %79 }
  0xe5   :  { %v257_v37 = vpop.xlane.xlu0 %256  ;;  %v103_v38 = vmul.f32 0.00390625, %v80_v36 }
  0xe6   :  { %v217_v39 = vpop.xlane.xlu2 %216  ;;  %291 = vst.msk [vmem:[#allocation2 + $0x18] sm:$0xff] %vm287_vm3, %v257_v37 }
  0xe7   :  { %140 = vst.msk [vmem:[#allocation2] sm:$0xff] %vm139_vm0, %v103_v38  ;;  %v239_v41 = vmul.f32 0.00390625, %v217_v39 }
  0xec   :  { %v255_v40 = vpop.xlane.xlu1 %254 }
  0xed   :  { %v118_v42 = vpop.xlane.xlu0 %117  ;;  %290 = vst.msk [vmem:[#allocation2 + $0x10] sm:$0xff] %vm287_vm3, %v255_v40  ;;  %v316_v43 = vld [vmem:[#allocation2 + $0x18] sm:$0xff] }
  0xee   :  { %v215_v44 = vpop.xlane.xlu2 %214  ;;  %154 = vst.msk [vmem:[#allocation2 + $0x8] sm:$0xff] %vm152_vm1, %v118_v42  ;;  %341 = vmatpush.msra.mxu0 %v316_v43 }
  0xef   :  { %276 = vst.msk [vmem:[#allocation2 + $0x8] sm:$0xff] %vm274_vm2, %v239_v41  ;;  %v238_v47 = vmul.f32 0.00390625, %v215_v44 }
  0xf4   :  { %v253_v45 = vpop.xlane.xlu1 %252  ;;  %v315_v46 = vld [vmem:[#allocation2 + $0x10] sm:$0xff] }
  0xf5   :  { %v116_v48 = vpop.xlane.xlu0 %115  ;;  %289 = vst.msk [vmem:[#allocation2 + $0x8] sm:$0xff] %vm287_vm3, %v253_v45  ;;  %342 = vmatpush.msra.mxu0 %v315_v46 }
  0xf6   :  { %v251_v49 = vpop.xlane.xlu2 %250  ;;  %153 = vst.msk [vmem:[#allocation2] sm:$0xff] %vm152_vm1, %v116_v48 }
  0xf7   :  { %275 = vst.msk [vmem:[#allocation2] sm:$0xff] %vm274_vm2, %v238_v47 }
  0xf8   :  { %288 = vst.msk [vmem:[#allocation2] sm:$0xff] %vm287_vm3, %v251_v49 }
  0xfc   :  { %v314_v50 = vld [vmem:[#allocation2 + $0x8] sm:$0xff] }
  0xfd   :  { %343 = vmatpush.msra.mxu0 %v314_v50 }
  0xff   :  { %v313_v52 = vld [vmem:[#allocation2] sm:$0xff] }
 0x100   :  { %344 = vmatpush.msra.mxu0 %v313_v52 }
 0x101   :  { %1004 = vmatmul.msk.f32.vlgmr.msra.gmra.mxu0 %vm325_vm4, %v300_v51 }
 0x17e   :  { %v346_v53 = vpop.f32.mrf.mxu0 }
 0x17f   :  { %v349_v54 = vmax.f32 %v346_v53, 0.0 }
 0x181   :  { %1005 = vmatpush.msk.msra.mxu1 %vm387_vm5, %v349_v54  ;;  %1030 = vmatpush.msk.msra.mxu2 %vm387_vm5, %v349_v54 }
 0x182   :  { %1031 = vmatpush.msk.msra.mxu3 %vm387_vm5, %v349_v54  ;;  %1006 = vmatmul.msk.f32.vlgmr.msra.gmra.mxu1 %vm350_vm6, %v301_v55 }
 0x183   :  { %1010 = vmatmul.msk.f32.vlgmr.msra.gmra.mxu2 %vm350_vm6, %v305_v56  ;;  %1014 = vmatmul.msk.f32.vlgmr.msra.gmra.mxu3 %vm350_vm6, %v309_v57 }
 0x18a   :  { %1007 = vmatmul.msk.f32.gmra.mxu1 %vm350_vm6, %v302_v58 }
 0x18b   :  { %1011 = vmatmul.msk.f32.gmra.mxu2 %vm350_vm6, %v306_v59  ;;  %1015 = vmatmul.msk.f32.gmra.mxu3 %vm350_vm6, %v310_v60 }
 0x192   :  { %1008 = vmatmul.msk.f32.gmra.mxu1 %vm350_vm6, %v303_v61 }
 0x193   :  { %1012 = vmatmul.msk.f32.gmra.mxu2 %vm350_vm6, %v307_v62  ;;  %1016 = vmatmul.msk.f32.gmra.mxu3 %vm350_vm6, %v311_v63 }
 0x19a   :  { %1009 = vmatmul.msk.f32.gmra.mxu1 %vm350_vm6, %v304_v0 }
 0x19b   :  { %1017 = vmatmul.msk.f32.gmra.mxu3 %vm350_vm6, %v312_v1  ;;  %1013 = vmatmul.msk.f32.gmra.mxu2 %vm350_vm6, %v308_v2 }
 0x1ff   :  { %v408_v3 = vpop.f32.mrf.mxu1 }
 0x200   :  { %456 = vrot.lane.b32.xlu0 %v408_v3, %s1159_s16 }
 0x206   :  { %v420_v4 = vpop.f32.mrf.mxu2  ;;  %v432_v5 = vpop.f32.mrf.mxu3 }
 0x207   :  { %472 = vrot.lane.b32.xlu1 %v432_v5, %s1159_s16  ;;  %464 = vrot.lane.b32.xlu2 %v420_v4, %s1159_s16  ;;  %v1288_v6 = vpop.f32.mrf.mxu1 }
 0x20e   :  { %v1290_v7 = vpop.f32.mrf.mxu2  ;;  %v435_v8 = vpop.f32.mrf.mxu3 }
 0x20f   :  { %474 = vrot.lane.b32.xlu0 %v435_v8, %s1159_s16  ;;  %458 = vrot.lane.b32.xlu1 %v1288_v6, %s1159_s16  ;;  %v414_v9 = vpop.f32.mrf.mxu1 }
 0x210   :  { %460 = vrot.lane.b32.xlu2 %v414_v9, %s1159_s16 }
 0x216   :  { %v1293_v10 = vpop.f32.mrf.mxu2  ;;  %v438_v11 = vpop.f32.mrf.mxu3 }
 0x217   :  { %468 = vrot.lane.b32.xlu0 %v1293_v10, %s1159_s16  ;;  %466 = vrot.lane.b32.xlu1 %v1290_v7, %s1159_s16  ;;  %v1297_v12 = vpop.f32.mrf.mxu1 }
 0x218   :  { %476 = vrot.lane.b32.xlu2 %v438_v11, %s1159_s16 }
 0x21e   :  { %v1299_v13 = vpop.f32.mrf.mxu3  ;;  %v1301_v14 = vpop.f32.mrf.mxu2 }
 0x21f   :  { %478 = vrot.lane.b32.xlu1 %v1299_v13, %s1159_s16  ;;  %462 = vrot.lane.b32.xlu0 %v1297_v12, %s1159_s16 }
 0x220   :  { %470 = vrot.lane.b32.xlu2 %v1301_v14, %s1159_s16 }
 0x261   :  { %v465_v16 = vpop.permute.xlu2 %464 }
 0x262   :  { %v496_v17 = vadd.f32 %v465_v16, %v420_v4 }
 0x264   :  { %v1022_v18 = vmul.f32 -1.442695, %v496_v17 }
 0x266   :  { %1054 = vpow2.f32 %v1022_v18 }
 0x26a   :  { %v461_v23 = vpop.permute.xlu2 %460 }
 0x26b   :  { %v494_v28 = vadd.f32 %v461_v23, %v414_v9 }
 0x26c   :  { %v1055_v20 = vpop.eup %1054 }
 0x26d   :  { %v544_v21 = vadd.f32 1.0, %v1055_v20  ;;  %v1020_v35 = vmul.f32 -1.442695, %v494_v28 }
 0x26f   :  { %1056 = vrcp.f32 %v544_v21  ;;  %v623_v31 = vand.u32 2147483648, %v544_v21  ;;  %v621_v34 = vand.u32 2147483647, %v544_v21  ;;  %vm617_vm8 = vweird.f32 %v544_v21 }
 0x271   :  { %v624_v40 = vor.u32 1.1754944e-38, %v623_v31  ;;  %vm622_vm10 = vcmp.eq.f32.partialorder %v621_v34, 8.507059e+37 }
 0x272   :  { %v457_v22 = vpop.permute.xlu0 %456  ;;  %v477_v39 = vpop.permute.xlu2 %476 }
 0x273   :  { %v492_v24 = vadd.f32 %v457_v22, %v408_v3  ;;  %v502_v44 = vadd.f32 %v477_v39, %v438_v11 }
 0x275   :  { %v1057_v25 = vpop.eup %1056  ;;  %v1018_v26 = vmul.f32 -1.442695, %v492_v24  ;;  %v1028_v50 = vmul.f32 -1.442695, %v502_v44 }
 0x276   :  { %v613_v27 = vmul.f32 %v1057_v25, %v544_v21  ;;  %vm618_vm7 = vweird.f32 %v1057_v25 }
 0x277   :  { %1058 = vpow2.f32 %v1018_v26  ;;  %vm619_vm9 = vmor %vm617_vm8, %vm618_vm7 }
 0x278   :  { %v614_v29 = vsub.f32 1.0, %v613_v27 }
 0x279   :  { %v473_v30 = vpop.permute.xlu1 %472 }
 0x27a   :  { %v500_v32 = vadd.f32 %v473_v30, %v432_v5  ;;  %v615_v33 = vmul.f32 %v1057_v25, %v614_v29  ;;  %v471_v63 = vpop.permute.xlu2 %470 }
 0x27b   :  { %v499_v11 = vadd.f32 %v471_v63, %v1301_v14 }
 0x27c   :  { %v1026_v36 = vmul.f32 -1.442695, %v500_v32  ;;  %v616_v37 = vadd.f32 %v1057_v25, %v615_v33 }
 0x27d   :  { %v1059_v38 = vpop.eup %1058  ;;  %v1025_v29 = vmul.f32 -1.442695, %v499_v11 }
 0x27e   :  { %v540_v41 = vadd.f32 1.0, %v1059_v38  ;;  %1060 = vpow2.f32 %v1026_v36  ;;  %v620_v42 = vsel %vm619_vm9, %v1057_v25, %v616_v37 }
 0x27f   :  { %1062 = vpow2.f32 %v1020_v35  ;;  %v625_v43 = vsel %vm622_vm10, %v624_v40, %v620_v42 }
 0x280   :  { %1064 = vrcp.f32 %v540_v41  ;;  %778 = vperm.xlu1 %1041, %v625_v43   ;;  %v563_v62 = vand.u32 2147483648, %v540_v41  ;;  %v561_v2 = vand.u32 2147483647, %v540_v41  ;;  %vm557_vm12 = vweird.f32 %v540_v41 }
 0x281   :  { %v475_v45 = vpop.permute.xlu0 %474  ;;  %v459_v46 = vpop.permute.xlu1 %458 }
 0x282   :  { %v501_v47 = vadd.f32 %v475_v45, %v435_v8  ;;  %v493_v48 = vadd.f32 %v459_v46, %v1288_v6  ;;  %vm562_vm14 = vcmp.eq.f32.partialorder %v561_v2, 8.507059e+37 }
 0x284   :  { %v1061_v49 = vpop.eup %1060  ;;  %v1027_v51 = vmul.f32 -1.442695, %v501_v47  ;;  %v1019_v54 = vmul.f32 -1.442695, %v493_v48 }
 0x285   :  { %v1063_v52 = vpop.eup %1062  ;;  %v1310_v53 = vadd.f32 1.0, %v1061_v49 }
 0x286   :  { %v1065_v55 = vpop.eup %1064  ;;  %1066 = vpow2.f32 %v1027_v51  ;;  %v1314_v57 = vadd.f32 1.0, %v1063_v52 }
 0x287   :  { %1068 = vrcp.f32 %v1310_v53  ;;  %v553_v56 = vmul.f32 %v1065_v55, %v540_v41  ;;  %vm558_vm11 = vweird.f32 %v1065_v55  ;;  %v683_v14 = vand.u32 2147483648, %v1310_v53 }
 0x288   :  { %1070 = vpow2.f32 %v1028_v50  ;;  %1042 = vset.pattern.permute.xlu1 %v1161_v19  ;;  %vm559_vm13 = vmor %vm557_vm12, %vm558_vm11  ;;  %v681_v30 = vand.u32 2147483647, %v1310_v53  ;;  %vm677_vm0 = vweird.f32 %v1310_v53  ;;  %vm587_vm6 = vweird.f32 %v1314_v57 }
 0x289   :  { %1072 = vpow2.f32 %v1019_v54  ;;  %v469_v58 = vpop.permute.xlu0 %468  ;;  %905 = vperm.xlu1 %1042, %v625_v43   ;;  %v467_v59 = vpop.permute.xlu1 %466  ;;  %v554_v60 = vsub.f32 1.0, %v553_v56  ;;  %v684_v36 = vor.u32 1.1754944e-38, %v683_v14 }
 0x28a   :  { %v497_v61 = vadd.f32 %v467_v59, %v1290_v7  ;;  %v498_v0 = vadd.f32 %v469_v58, %v1293_v10  ;;  %1074 = vrcp.f32 %v1314_v57  ;;  %v564_v7 = vor.u32 1.1754944e-38, %v563_v62 }
 0x28b   :  { %v555_v1 = vmul.f32 %v1065_v55, %v554_v60  ;;  %vm682_vm2 = vcmp.eq.f32.partialorder %v681_v30, 8.507059e+37 }
 0x28c   :  { %v1067_v3 = vpop.eup %1066  ;;  %v1023_v4 = vmul.f32 -1.442695, %v497_v61  ;;  %v1024_v17 = vmul.f32 -1.442695, %v498_v0  ;;  %v593_v0 = vand.u32 2147483648, %v1314_v57 }
 0x28d   :  { %v1069_v5 = vpop.eup %1068  ;;  %v1319_v6 = vadd.f32 1.0, %v1067_v3  ;;  %v556_v8 = vadd.f32 %v1065_v55, %v555_v1 }
 0x28e   :  { %v1071_v9 = vpop.eup %1070  ;;  %v673_v16 = vmul.f32 %v1069_v5, %v1310_v53  ;;  %vm678_vm15 = vweird.f32 %v1069_v5  ;;  %v594_v14 = vor.u32 1.1754944e-38, %v593_v0 }
 0x28f   :  { %v1073_v10 = vpop.eup %1072  ;;  %1076 = vrcp.f32 %v1319_v6  ;;  %v560_v18 = vsel %vm559_vm13, %v1065_v55, %v556_v8  ;;  %v1326_v23 = vadd.f32 1.0, %v1071_v9  ;;  %vm679_vm1 = vmor %vm677_vm0, %vm678_vm15  ;;  %vm692_vm12 = vweird.f32 %v1319_v6 }
 0x290   :  { %v1324_v20 = vadd.f32 1.0, %v1073_v10  ;;  %1078 = vpow2.f32 %v1023_v4  ;;  %v565_v21 = vsel %vm562_vm14, %v564_v7, %v560_v18  ;;  %v674_v22 = vsub.f32 1.0, %v673_v16  ;;  %v1331_v28 = vpop.eup %1074 }
 0x291   :  { %v479_v24 = vpop.permute.xlu1 %478  ;;  %v463_v25 = vpop.permute.xlu0 %462  ;;  %889 = vperm.xlu2 %1040, %v565_v21   ;;  %758 = vperm.xlu0 %1039, %v565_v21   ;;  %v583_v37 = vmul.f32 %v1331_v28, %v1314_v57  ;;  %vm588_vm8 = vweird.f32 %v1331_v28  ;;  %v698_v10 = vand.u32 2147483648, %v1319_v6  ;;  %v591_v21 = vand.u32 2147483647, %v1314_v57 }
 0x292   :  { %1080 = vrcp.f32 %v1324_v20  ;;  %v503_v26 = vadd.f32 %v479_v24, %v1299_v13  ;;  %v675_v27 = vmul.f32 %v1069_v5, %v674_v22  ;;  %v495_v32 = vadd.f32 %v463_v25, %v1297_v12  ;;  %vm1383_vm11 = vmor %vm587_vm6, %vm588_vm8 }
 0x293   :  { %1082 = vpow2.f32 %v1024_v17  ;;  %v584_v44 = vsub.f32 1.0, %v583_v37  ;;  %v578_v50 = vand.u32 2147483648, %v1324_v20  ;;  %v576_v53 = vand.u32 2147483647, %v1324_v20 }
 0x294   :  { %v1029_v31 = vmul.f32 -1.442695, %v503_v26  ;;  %v676_v33 = vadd.f32 %v1069_v5, %v675_v27  ;;  %1084 = vrcp.f32 %v1326_v23  ;;  %v1021_v40 = vmul.f32 -1.442695, %v495_v32 }
 0x295   :  { %v1336_v34 = vpop.eup %1076  ;;  %v585_v55 = vmul.f32 %v1331_v28, %v584_v44  ;;  %vm572_vm4 = vweird.f32 %v1324_v20  ;;  %v579_v61 = vor.u32 1.1754944e-38, %v578_v50  ;;  %vm577_vm7 = vcmp.eq.f32.partialorder %v576_v53, 8.507059e+37 }
 0x296   :  { %v1079_v13 = vpop.eup %1078  ;;  %1086 = vpow2.f32 %v1029_v31  ;;  %v680_v35 = vsel %vm679_vm1, %v1069_v5, %v676_v33  ;;  %v688_v12 = vmul.f32 %v1336_v34, %v1319_v6  ;;  %vm693_vm9 = vweird.f32 %v1336_v34 }
 0x297   :  { %v1341_v38 = vadd.f32 1.0, %v1079_v13  ;;  %1088 = vpow2.f32 %v1025_v29  ;;  %v685_v41 = vsel %vm682_vm2, %v684_v36, %v680_v35  ;;  %v586_v5 = vadd.f32 %v1331_v28, %v585_v55  ;;  %vm1396_vm14 = vmor %vm692_vm12, %vm693_vm9 }
 0x298   :  { %v1081_v39 = vpop.eup %1080  ;;  %v689_v47 = vsub.f32 1.0, %v688_v12  ;;  %v696_v22 = vand.u32 2147483647, %v1319_v6  ;;  %v699_v31 = vor.u32 1.1754944e-38, %v698_v10  ;;  %vm592_vm2 = vcmp.eq.f32.partialorder %v591_v21, 8.507059e+37  ;;  %v1103_v21 = vld [vmem:[#allocation3 + $0xc8] sm:$0xff] }
 0x299   :  { %v1083_v42 = vpop.eup %1082  ;;  %1090 = vrcp.f32 %v1341_v38  ;;  %921 = vperm.xlu2 %1040, %v685_v41   ;;  %798 = vperm.xlu0 %1039, %v685_v41   ;;  %v568_v43 = vmul.f32 %v1081_v39, %v1324_v20  ;;  %vm573_vm3 = vweird.f32 %v1081_v39  ;;  %v638_v8 = vand.u32 2147483648, %v1341_v38 }
 0x29a   :  { %v1347_v45 = vpop.eup %1084  ;;  %v1349_v49 = vadd.f32 1.0, %v1083_v42  ;;  %1092 = vpow2.f32 %v1021_v40  ;;  %v690_v60 = vmul.f32 %v1336_v34, %v689_v47  ;;  %vm574_vm5 = vmor %vm572_vm4, %vm573_vm3  ;;  %v636_v16 = vand.u32 2147483647, %v1341_v38 }
 0x29b   :  { %v569_v46 = vsub.f32 1.0, %v568_v43  ;;  %v703_v56 = vmul.f32 %v1347_v45, %v1326_v23  ;;  %vm632_vm13 = vweird.f32 %v1341_v38  ;;  %v639_v57 = vor.u32 1.1754944e-38, %v638_v8 }
 0x29c   :  { %v1087_v48 = vpop.eup %1086  ;;  %v691_v9 = vadd.f32 %v1336_v34, %v690_v60  ;;  %v590_v6 = vsel %vm1383_vm11, %v1331_v28, %v586_v5  ;;  %vm637_vm0 = vcmp.eq.f32.partialorder %v636_v16, 8.507059e+37  ;;  %vm697_vm1 = vcmp.eq.f32.partialorder %v696_v22, 8.507059e+37 }
 0x29d   :  { %v1352_v51 = vadd.f32 1.0, %v1087_v48  ;;  %v570_v52 = vmul.f32 %v1081_v39, %v569_v46  ;;  %v1089_v54 = vpop.eup %1088  ;;  %v704_v11 = vsub.f32 1.0, %v703_v56  ;;  %vm708_vm3 = vweird.f32 %v1347_v45 }
 0x29e   :  { %v1367_v2 = vadd.f32 1.0, %v1089_v54  ;;  %v695_v27 = vsel %vm1396_vm14, %v1336_v34, %v691_v9  ;;  %v595_v34 = vsel %vm592_vm2, %v594_v14, %v590_v6  ;;  %vm707_vm4 = vweird.f32 %v1326_v23  ;;  %v881_v14 = vld [vmem:[#allocation3 + $0x148] sm:$0xff] }
 0x29f   :  { %v1091_v58 = vpop.eup %1090  ;;  %1094 = vrcp.f32 %v1352_v51  ;;  %v571_v59 = vadd.f32 %v1081_v39, %v570_v52  ;;  %v705_v29 = vmul.f32 %v1347_v45, %v704_v11  ;;  %v1413_v28 = vsel %vm697_vm1, %v699_v31, %v695_v27  ;;  %v873_v31 = vld [vmem:[#allocation3 + $0x108] sm:$0xff] }
 0x2a0   :  { %1096 = vrcp.f32 %v1349_v49  ;;  %v628_v62 = vmul.f32 %v1091_v58, %v1341_v38  ;;  %v1093_v1 = vpop.eup %1092  ;;  %vm633_vm10 = vweird.f32 %v1091_v58  ;;  %v713_v38 = vand.u32 2147483648, %v1326_v23 }
 0x2a1   :  { %v575_v63 = vsel %vm574_vm5, %v1081_v39, %v571_v59  ;;  %1043 = vset.pattern.permute.xlu2 %v1160_v15  ;;  %v1377_v18 = vadd.f32 1.0, %v1093_v1  ;;  %1098 = vrcp.f32 %v1367_v2  ;;  %vm634_vm15 = vmor %vm632_vm13, %vm633_vm10  ;;  %v706_v36 = vadd.f32 %v1347_v45, %v705_v29 }
 0x2a2   :  { %v580_v3 = vsel %vm577_vm7, %v579_v61, %v575_v63  ;;  %v629_v4 = vsub.f32 1.0, %v628_v62  ;;  %v711_v39 = vand.u32 2147483647, %v1326_v23  ;;  %vm709_vm5 = vmor %vm707_vm4, %vm708_vm3  ;;  %v714_v43 = vor.u32 1.1754944e-38, %v713_v38  ;;  %v732_v38 = vld [vmem:[#allocation3] sm:$0xff] }
 0x2a3   :  { %893 = vperm.xlu1 %1042, %v580_v3   ;;  %763 = vperm.xlu2 %1043, %v580_v3   ;;  %1100 = vrcp.f32 %v1377_v18  ;;  %v710_v41 = vsel %vm709_vm5, %v1347_v45, %v706_v36  ;;  %v728_v50 = vand.u32 2147483648, %v1352_v51  ;;  %v653_v53 = vand.u32 2147483648, %v1349_v49 }
 0x2a4   :  { %v630_v7 = vmul.f32 %v1091_v58, %v629_v4  ;;  %vm712_vm6 = vcmp.eq.f32.partialorder %v711_v39, 8.507059e+37  ;;  %vm722_vm9 = vweird.f32 %v1352_v51  ;;  %v726_v54 = vand.u32 2147483647, %v1352_v51 }
 0x2a5   :  { %v1375_v17 = vpop.eup %1094  ;;  %v715_v23 = vsel %vm712_vm6, %v714_v43, %v710_v41  ;;  %vm647_vm10 = vweird.f32 %v1349_v49  ;;  %v651_v56 = vand.u32 2147483647, %v1349_v49  ;;  %v729_v60 = vor.u32 1.1754944e-38, %v728_v50  ;;  %v751_v41 = vld [vmem:[#allocation3 + $0x98] sm:$0xff] }
 0x2a6   :  { %v1390_v24 = vpop.eup %1096  ;;  %v631_v25 = vadd.f32 %v1091_v58, %v630_v7  ;;  %v718_v32 = vmul.f32 %v1375_v17, %v1352_v51  ;;  %vm723_vm7 = vweird.f32 %v1375_v17  ;;  %v654_v62 = vor.u32 1.1754944e-38, %v653_v53  ;;  %v874_v53 = vld [vmem:[#allocation3 + $0x110] sm:$0xff] }
 0x2a7   :  { %v643_v13 = vmul.f32 %v1390_v24, %v1349_v49  ;;  %v1417_v35 = vpop.eup %1098  ;;  %vm648_vm8 = vweird.f32 %v1390_v24  ;;  %vm724_vm11 = vmor %vm722_vm9, %vm723_vm7  ;;  %vm727_vm13 = vcmp.eq.f32.partialorder %v726_v54, 8.507059e+37  ;;  %vm652_vm14 = vcmp.eq.f32.partialorder %v651_v56, 8.507059e+37  ;;  %v875_v54 = vld [vmem:[#allocation3 + $0x118] sm:$0xff] }
 0x2a8   :  { %v635_v30 = vsel %vm634_vm15, %v1091_v58, %v631_v25  ;;  %v719_v37 = vsub.f32 1.0, %v718_v32  ;;  %v658_v46 = vmul.f32 %v1417_v35, %v1367_v2  ;;  %vm649_vm12 = vmor %vm647_vm10, %vm648_vm8  ;;  %vm663_vm15 = vweird.f32 %v1417_v35  ;;  %v880_v25 = vld [vmem:[#allocation3 + $0x140] sm:$0xff] }
 0x2a9   :  { %v640_v33 = vsel %vm637_vm0, %v639_v57, %v635_v30  ;;  %v644_v12 = vsub.f32 1.0, %v643_v13  ;;  %v1424_v40 = vpop.eup %1100  ;;  %v668_v1 = vand.u32 2147483648, %v1367_v2  ;;  %vm662_vm1 = vweird.f32 %v1367_v2  ;;  %v872_v30 = vld [vmem:[#allocation3 + $0x100] sm:$0xff]  ;;  %v735_v13 = vld [vmem:[#allocation3 + $0x18] sm:$0xff] }
 0x2aa   :  { %783 = vperm.xlu0 %1039, %v640_v33   ;;  %v720_v42 = vmul.f32 %v1375_v17, %v719_v37  ;;  %v598_v47 = vmul.f32 %v1424_v40, %v1377_v18  ;;  %v659_v52 = vsub.f32 1.0, %v658_v46  ;;  %vm603_vm0 = vweird.f32 %v1424_v40  ;;  %vm664_vm2 = vmor %vm662_vm1, %vm663_vm15 }
 0x2ab   :  { %1045 = vset.pattern.permute.xlu1 %v1160_v15  ;;  %803 = vperm.xlu2 %1043, %v1413_v28   ;;  %v645_v44 = vmul.f32 %v1390_v24, %v644_v12  ;;  %v666_v4 = vand.u32 2147483647, %v1367_v2  ;;  %v608_v5 = vand.u32 2147483648, %v1377_v18  ;;  %vm602_vm3 = vweird.f32 %v1377_v18  ;;  %v733_v12 = vld [vmem:[#allocation3 + $0x8] sm:$0xff] }
 0x2ac   :  { %768 = vperm.xlu1 %1045, %v595_v34   ;;  %v721_v45 = vadd.f32 %v1375_v17, %v720_v42  ;;  %v599_v55 = vsub.f32 1.0, %v598_v47  ;;  %v660_v61 = vmul.f32 %v1417_v35, %v659_v52  ;;  %v606_v8 = vand.u32 2147483647, %v1377_v18  ;;  %vm604_vm4 = vmor %vm602_vm3, %vm603_vm0  ;;  %v1102_v18 = vld [vmem:[#allocation3 + $0xc0] sm:$0xff] }
 0x2ad   :  { %v646_v48 = vadd.f32 %v1390_v24, %v645_v44  ;;  %v669_v11 = vor.u32 1.1754944e-38, %v668_v1  ;;  %vm667_vm5 = vcmp.eq.f32.partialorder %v666_v4, 8.507059e+37  ;;  %v609_v16 = vor.u32 1.1754944e-38, %v608_v5  ;;  %v742_v4 = vld [vmem:[#allocation3 + $0x50] sm:$0xff]  ;;  %v743_v5 = vld [vmem:[#allocation3 + $0x58] sm:$0xff] }
 0x2ae   :  { %v725_v58 = vsel %vm724_vm11, %v1375_v17, %v721_v45  ;;  %v600_v63 = vmul.f32 %v1424_v40, %v599_v55  ;;  %v661_v0 = vadd.f32 %v1417_v35, %v660_v61  ;;  %vm607_vm6 = vcmp.eq.f32.partialorder %v606_v8, 8.507059e+37  ;;  %v749_v45 = vld [vmem:[#allocation3 + $0x88] sm:$0xff] }
 0x2af   :  { %v650_v59 = vsel %vm649_vm12, %v1390_v24, %v646_v48  ;;  %v730_v51 = vsel %vm727_vm13, %v729_v60, %v725_v58  ;;  %v741_v24 = vld [vmem:[#allocation3 + $0x48] sm:$0xff]  ;;  %v867_v60 = vld [vmem:[#allocation3 + $0xd8] sm:$0xff] }
 0x2b0   :  { %v655_v49 = vsel %vm652_vm14, %v654_v62, %v650_v59  ;;  %v601_v3 = vadd.f32 %v1424_v40, %v600_v63  ;;  %v665_v9 = vsel %vm664_vm2, %v1417_v35, %v661_v0  ;;  %v866_v59 = vld [vmem:[#allocation3 + $0xd0] sm:$0xff] }
 0x2b1   :  { %v670_v10 = vsel %vm667_vm5, %v669_v11, %v665_v9  ;;  %v736_v9 = vld [vmem:[#allocation3 + $0x20] sm:$0xff]  ;;  %v737_v11 = vld [vmem:[#allocation3 + $0x28] sm:$0xff] }
 0x2b2   :  { %1046 = vset.pattern.permute.xlu0 %v1161_v19  ;;  %v605_v7 = vsel %vm604_vm4, %v1424_v40, %v601_v3  ;;  %v750_v40 = vld [vmem:[#allocation3 + $0x90] sm:$0xff] }
 0x2b3   :  { %897 = vperm.xlu0 %1046, %v595_v34   ;;  %1044 = vset.pattern.permute.xlu2 %v1161_v19  ;;  %v610_v2 = vsel %vm607_vm6, %v609_v16, %v605_v7 }
 0x2b4   :  { %808 = vperm.xlu1 %1045, %v715_v23   ;;  %909 = vperm.xlu2 %1044, %v640_v33   ;;  %v734_v33 = vld [vmem:[#allocation3 + $0x10] sm:$0xff] }
 0x2bb   :  { %1051 = vset.pattern.permute.xlu0 %v1160_v15 }
 0x2bc   :  { %1048 = vset.pattern.permute.xlu1 %v1161_v19  ;;  %813 = vperm.xlu0 %1051, %v730_v51  }
 0x2bd   :  { %913 = vperm.xlu1 %1048, %v655_v49   ;;  %1047 = vset.pattern.permute.xlu2 %v1160_v15 }
 0x2be   :  { %788 = vperm.xlu2 %1047, %v655_v49   ;;  %v745_v49 = vld [vmem:[#allocation3 + $0x68] sm:$0xff] }
 0x2c4   :  { %1052 = vset.pattern.permute.xlu0 %v1161_v19 }
 0x2c5   :  { %1050 = vset.pattern.permute.xlu1 %v1160_v15  ;;  %917 = vperm.xlu0 %1052, %v670_v10   ;;  %v740_v15 = vld [vmem:[#allocation3 + $0x40] sm:$0xff] }
 0x2c6   :  { %793 = vperm.xlu1 %1050, %v670_v10   ;;  %773 = vperm.xlu2 %1047, %v610_v2  }
 0x2cd   :  { %929 = vperm.xlu0 %1052, %v715_v23   ;;  %v748_v23 = vld [vmem:[#allocation3 + $0x80] sm:$0xff] }
 0x2ce   :  { %1053 = vset.pattern.permute.xlu1 %v1161_v19  ;;  %1049 = vset.pattern.permute.xlu2 %v1161_v19 }
 0x2cf   :  { %925 = vperm.xlu1 %1053, %v1413_v28   ;;  %901 = vperm.xlu2 %1049, %v610_v2   ;;  %v738_v2 = vld [vmem:[#allocation3 + $0x30] sm:$0xff] }
 0x2d7   :  { %933 = vperm.xlu2 %1049, %v730_v51   ;;  %v744_v51 = vld [vmem:[#allocation3 + $0x60] sm:$0xff] }
 0x2eb   :  { %v890_v17 = vpop.permute.xlu2 %889 }
 0x2ec   :  { %v936_v20 = vmul.f32 %v1102_v18, %v890_v17  ;;  %v937_v22 = vmul.f32 %v1103_v21, %v890_v17  ;;  %v739_v17 = vld [vmem:[#allocation3 + $0x38] sm:$0xff] }
 0x2ee   :  { %961 = vst [vmem:[#allocation6 + $0xc0] sm:$0xff] %v936_v20 }
 0x2ef   :  { %962 = vst [vmem:[#allocation6 + $0xc8] sm:$0xff] %v937_v22 }
 0x2f2   :  { %v779_v26 = vpop.permute.xlu1 %778 }
 0x2f3   :  { %v824_v57 = vmul.f32 %v779_v26, %v740_v15  ;;  %v825_v6 = vmul.f32 %v779_v26, %v741_v24  ;;  %v922_v27 = vpop.permute.xlu2 %921  ;;  %v868_v24 = vld [vmem:[#allocation3 + $0xe0] sm:$0xff]  ;;  %v869_v26 = vld [vmem:[#allocation3 + $0xe8] sm:$0xff] }
 0x2f4   :  { %v952_v19 = vmul.f32 %v922_v27, %v880_v25  ;;  %v953_v29 = vmul.f32 %v922_v27, %v881_v14  ;;  %v752_v25 = vld [vmem:[#allocation3 + $0xa0] sm:$0xff]  ;;  %v753_v14 = vld [vmem:[#allocation3 + $0xa8] sm:$0xff] }
 0x2f5   :  { %848 = vst [vmem:[#allocation6 + $0x40] sm:$0xff] %v824_v57 }
 0x2f6   :  { %849 = vst [vmem:[#allocation6 + $0x48] sm:$0xff] %v825_v6 }
 0x2f7   :  { %977 = vst [vmem:[#allocation6 + $0x140] sm:$0xff] %v952_v19 }
 0x2f8   :  { %978 = vst [vmem:[#allocation6 + $0x148] sm:$0xff] %v953_v29 }
 0x2fb   :  { %v906_v32 = vpop.permute.xlu1 %905 }
 0x2fc   :  { %v944_v28 = vmul.f32 %v906_v32, %v872_v30  ;;  %v945_v34 = vmul.f32 %v906_v32, %v873_v31  ;;  %v870_v31 = vld [vmem:[#allocation3 + $0xf0] sm:$0xff]  ;;  %v871_v32 = vld [vmem:[#allocation3 + $0xf8] sm:$0xff] }
 0x2fd   :  { %v764_v35 = vpop.permute.xlu2 %763 }
 0x2fe   :  { %969 = vst [vmem:[#allocation6 + $0x100] sm:$0xff] %v944_v28  ;;  %v818_v36 = vmul.f32 %v764_v35, %v734_v33  ;;  %v819_v37 = vmul.f32 %v764_v35, %v735_v13  ;;  %v876_v35 = vld [vmem:[#allocation3 + $0x120] sm:$0xff] }
 0x2ff   :  { %970 = vst [vmem:[#allocation6 + $0x108] sm:$0xff] %v945_v34  ;;  %v754_v34 = vld [vmem:[#allocation3 + $0xb0] sm:$0xff] }
 0x300   :  { %842 = vst [vmem:[#allocation6 + $0x10] sm:$0xff] %v818_v36  ;;  %v877_v36 = vld [vmem:[#allocation3 + $0x128] sm:$0xff] }
 0x301   :  { %843 = vst [vmem:[#allocation6 + $0x18] sm:$0xff] %v819_v37  ;;  %v755_v37 = vld [vmem:[#allocation3 + $0xb8] sm:$0xff] }
 0x303   :  { %v759_v39 = vpop.permute.xlu0 %758 }
 0x304   :  { %v816_v42 = vmul.f32 %v759_v39, %v732_v38  ;;  %v817_v43 = vmul.f32 %v759_v39, %v733_v12 }
 0x305   :  { %v804_v44 = vpop.permute.xlu2 %803 }
 0x306   :  { %840 = vst [vmem:[#allocation6] sm:$0xff] %v816_v42  ;;  %v834_v46 = vmul.f32 %v804_v44, %v750_v40  ;;  %v835_v47 = vmul.f32 %v804_v44, %v751_v41  ;;  %v886_v40 = vld [vmem:[#allocation3 + $0x170] sm:$0xff]  ;;  %v887_v41 = vld [vmem:[#allocation3 + $0x178] sm:$0xff] }
 0x307   :  { %841 = vst [vmem:[#allocation6 + $0x8] sm:$0xff] %v817_v43 }
 0x308   :  { %858 = vst [vmem:[#allocation6 + $0x90] sm:$0xff] %v834_v46 }
 0x309   :  { %859 = vst [vmem:[#allocation6 + $0x98] sm:$0xff] %v835_v47 }
 0x30b   :  { %v799_v48 = vpop.permute.xlu0 %798 }
 0x30c   :  { %v832_v50 = vmul.f32 %v799_v48, %v748_v23  ;;  %v833_v52 = vmul.f32 %v799_v48, %v749_v45  ;;  %v878_v45 = vld [vmem:[#allocation3 + $0x130] sm:$0xff] }
 0x30d   :  { %v746_v48 = vld [vmem:[#allocation3 + $0x70] sm:$0xff] }
 0x30e   :  { %856 = vst [vmem:[#allocation6 + $0x80] sm:$0xff] %v832_v50  ;;  %v910_v55 = vpop.permute.xlu2 %909  ;;  %v747_v50 = vld [vmem:[#allocation3 + $0x78] sm:$0xff] }
 0x30f   :  { %857 = vst [vmem:[#allocation6 + $0x88] sm:$0xff] %v833_v52  ;;  %v946_v56 = vmul.f32 %v910_v55, %v874_v53  ;;  %v947_v58 = vmul.f32 %v910_v55, %v875_v54  ;;  %v879_v52 = vld [vmem:[#allocation3 + $0x138] sm:$0xff] }
 0x311   :  { %971 = vst [vmem:[#allocation6 + $0x110] sm:$0xff] %v946_v56 }
 0x312   :  { %972 = vst [vmem:[#allocation6 + $0x118] sm:$0xff] %v947_v58 }
 0x315   :  { %v894_v61 = vpop.permute.xlu1 %893 }
 0x316   :  { %v938_v62 = vmul.f32 %v894_v61, %v866_v59  ;;  %v939_v63 = vmul.f32 %v894_v61, %v867_v60  ;;  %v884_v60 = vld [vmem:[#allocation3 + $0x160] sm:$0xff]  ;;  %v885_v61 = vld [vmem:[#allocation3 + $0x168] sm:$0xff] }
 0x318   :  { %963 = vst [vmem:[#allocation6 + $0xd0] sm:$0xff] %v938_v62  ;;  %v789_v0 = vpop.permute.xlu2 %788 }
 0x319   :  { %964 = vst [vmem:[#allocation6 + $0xd8] sm:$0xff] %v939_v63  ;;  %v828_v1 = vmul.f32 %v789_v0, %v744_v51  ;;  %v829_v3 = vmul.f32 %v789_v0, %v745_v49  ;;  %v882_v63 = vld [vmem:[#allocation3 + $0x150] sm:$0xff]  ;;  %v883_v51 = vld [vmem:[#allocation3 + $0x158] sm:$0xff] }
 0x31b   :  { %852 = vst [vmem:[#allocation6 + $0x60] sm:$0xff] %v828_v1 }
 0x31c   :  { %853 = vst [vmem:[#allocation6 + $0x68] sm:$0xff] %v829_v3  ;;  %v784_v8 = vpop.permute.xlu0 %783 }
 0x31d   :  { %v826_v7 = vmul.f32 %v784_v8, %v742_v4  ;;  %v827_v16 = vmul.f32 %v784_v8, %v743_v5 }
 0x31e   :  { %v769_v10 = vpop.permute.xlu1 %768 }
 0x31f   :  { %850 = vst [vmem:[#allocation6 + $0x50] sm:$0xff] %v826_v7  ;;  %v820_v18 = vmul.f32 %v769_v10, %v736_v9  ;;  %v821_v20 = vmul.f32 %v769_v10, %v737_v11 }
 0x320   :  { %851 = vst [vmem:[#allocation6 + $0x58] sm:$0xff] %v827_v16  ;;  %v774_v21 = vpop.permute.xlu2 %773 }
 0x321   :  { %844 = vst [vmem:[#allocation6 + $0x20] sm:$0xff] %v820_v18  ;;  %v822_v22 = vmul.f32 %v774_v21, %v738_v2  ;;  %v823_v15 = vmul.f32 %v774_v21, %v739_v17 }
 0x322   :  { %845 = vst [vmem:[#allocation6 + $0x28] sm:$0xff] %v821_v20 }
 0x323   :  { %846 = vst [vmem:[#allocation6 + $0x30] sm:$0xff] %v822_v22 }
 0x324   :  { %847 = vst [vmem:[#allocation6 + $0x38] sm:$0xff] %v823_v15 }
 0x325   :  { %v898_v57 = vpop.permute.xlu0 %897 }
 0x326   :  { %v809_v6 = vpop.permute.xlu1 %808  ;;  %v940_v27 = vmul.f32 %v898_v57, %v868_v24  ;;  %v941_v30 = vmul.f32 %v898_v57, %v869_v26 }
 0x327   :  { %v836_v19 = vmul.f32 %v809_v6, %v752_v25  ;;  %v837_v29 = vmul.f32 %v809_v6, %v753_v14 }
 0x328   :  { %965 = vst [vmem:[#allocation6 + $0xe0] sm:$0xff] %v940_v27 }
 0x329   :  { %860 = vst [vmem:[#allocation6 + $0xa0] sm:$0xff] %v836_v19  ;;  %v902_v33 = vpop.permute.xlu2 %901 }
 0x32a   :  { %861 = vst [vmem:[#allocation6 + $0xa8] sm:$0xff] %v837_v29  ;;  %v942_v13 = vmul.f32 %v902_v33, %v870_v31  ;;  %v943_v28 = vmul.f32 %v902_v33, %v871_v32 }
 0x32b   :  { %966 = vst [vmem:[#allocation6 + $0xe8] sm:$0xff] %v941_v30 }
 0x32c   :  { %967 = vst [vmem:[#allocation6 + $0xf0] sm:$0xff] %v942_v13 }
 0x32d   :  { %968 = vst [vmem:[#allocation6 + $0xf8] sm:$0xff] %v943_v28 }
 0x32e   :  { %v814_v38 = vpop.permute.xlu0 %813 }
 0x32f   :  { %v914_v12 = vpop.permute.xlu1 %913  ;;  %v838_v39 = vmul.f32 %v814_v38, %v754_v34  ;;  %v839_v44 = vmul.f32 %v814_v38, %v755_v37 }
 0x330   :  { %v948_v42 = vmul.f32 %v914_v12, %v876_v35  ;;  %v949_v43 = vmul.f32 %v914_v12, %v877_v36 }
 0x331   :  { %862 = vst [vmem:[#allocation6 + $0xb0] sm:$0xff] %v838_v39  ;;  %v934_v46 = vpop.permute.xlu2 %933 }
 0x332   :  { %973 = vst [vmem:[#allocation6 + $0x120] sm:$0xff] %v948_v42  ;;  %v958_v47 = vmul.f32 %v934_v46, %v886_v40  ;;  %v959_v23 = vmul.f32 %v934_v46, %v887_v41 }
 0x333   :  { %974 = vst [vmem:[#allocation6 + $0x128] sm:$0xff] %v949_v43 }
 0x334   :  { %863 = vst [vmem:[#allocation6 + $0xb8] sm:$0xff] %v839_v44 }
 0x335   :  { %983 = vst [vmem:[#allocation6 + $0x170] sm:$0xff] %v958_v47 }
 0x336   :  { %984 = vst [vmem:[#allocation6 + $0x178] sm:$0xff] %v959_v23 }
 0x337   :  { %v918_v53 = vpop.permute.xlu0 %917 }
 0x338   :  { %v794_v54 = vpop.permute.xlu1 %793  ;;  %v950_v55 = vmul.f32 %v918_v53, %v878_v45  ;;  %v951_v59 = vmul.f32 %v918_v53, %v879_v52 }
 0x339   :  { %v830_v56 = vmul.f32 %v794_v54, %v746_v48  ;;  %v831_v58 = vmul.f32 %v794_v54, %v747_v50 }
 0x33a   :  { %975 = vst [vmem:[#allocation6 + $0x130] sm:$0xff] %v950_v55 }
 0x33b   :  { %854 = vst [vmem:[#allocation6 + $0x70] sm:$0xff] %v830_v56 }
 0x33c   :  { %855 = vst [vmem:[#allocation6 + $0x78] sm:$0xff] %v831_v58 }
 0x33d   :  { %976 = vst [vmem:[#allocation6 + $0x138] sm:$0xff] %v951_v59 }
 0x33f   :  { %v930_v62 = vpop.permute.xlu0 %929 }
 0x340   :  { %v956_v49 = vmul.f32 %v930_v62, %v884_v60  ;;  %v957_v0 = vmul.f32 %v930_v62, %v885_v61 }
 0x341   :  { %v926_v1 = vpop.permute.xlu1 %925 }
 0x342   :  { %981 = vst [vmem:[#allocation6 + $0x160] sm:$0xff] %v956_v49  ;;  %v954_v3 = vmul.f32 %v926_v1, %v882_v63  ;;  %v955_v4 = vmul.f32 %v926_v1, %v883_v51 }
 0x343   :  { %982 = vst [vmem:[#allocation6 + $0x168] sm:$0xff] %v957_v0 }
 0x344   :  { %979 = vst [vmem:[#allocation6 + $0x150] sm:$0xff] %v954_v3 }
 0x345   :  { %980 = vst [vmem:[#allocation6 + $0x158] sm:$0xff] %v955_v4 }
 0x346   :  { %997 = dma.vmem_to_hbm [thread:$0]  %s990_s0, 6144, %s992_s21, [#allocation5], %s1157_s17, %s1157_s17, %s1158_s18  }
 0x347   :  { %1154 = dma.done.wait [#allocation5], 6144  }
 0x348   :  { %1155 = vsyncadd [#allocation5], 4294961152 }
 0x349   :  { %1002 = vsyncpa [#allocation4], 1 }
 0x34a   :  { %1003 = vsyncpa [#allocation5], 1 }

</bundles_post_ra>
